<compile_context>
chip_gen: v6e
topology: v6e:2x2x1
jax: 0.10.0
libtpu: 0.0.40
codegen_flags: <defaults>
</compile_context>

<pallas_src>
import jax
import jax.numpy as jnp
from jax.experimental import pallas as pl
from jax.experimental.pallas import tpu as pltpu


def mf_kernel(u_ref, i_ref, o_ref):
    # u_ref / i_ref: (n_factors, TB) factors-major tiles of gathered rows.
    # o_ref:         (1, TB) lane-dense output tile.
    prod = u_ref[...].astype(jnp.float32) * i_ref[...].astype(jnp.float32)
    o_ref[...] = jnp.sum(prod, axis=0, keepdims=True)    # XLU sublane reduce


def _round_up(x, m):
    return pl.cdiv(x, m) * m


def mf_forward(user_factors_fm, item_factors_fm, user, item, *, tb=8192):
    """pred[b] = sum_f user_factors_fm[f, user[b]] * item_factors_fm[f, item[b]].

    `user_factors_fm` / `item_factors_fm` are factors-major, i.e. the transpose
    of the PyTorch nn.Embedding weights: shape (n_factors, n_users/items).
    """
    B = user.shape[0]
    n_factors = user_factors_fm.shape[0]
    itemsize = jnp.dtype(user_factors_fm.dtype).itemsize

    # --- tile selection -----------------------------------------------------
    # Only shrink the tile when the batch itself is smaller than tb (lane axis
    # must stay a multiple of 128); large B keeps the full 1 MiB+ blocks.
    tb = min(tb, max(128, _round_up(B, 128)))
    # Prefer >=2 grid steps when the batch allows it so the "parallel" axis can
    # be split across the two v7x TensorCores (no-op for large B).
    if B > 2 * 128:
        tb = min(tb, _round_up(pl.cdiv(B, 2), 128))
    b_pad = _round_up(B, tb)

    # --- pad the (cheap) index vectors, not the gathered activations ---------
    user = user.astype(jnp.int32)
    item = item.astype(jnp.int32)
    if b_pad != B:
        pad = b_pad - B
        user = jnp.concatenate([user, jnp.zeros((pad,), jnp.int32)])  # valid idx
        item = jnp.concatenate([item, jnp.zeros((pad,), jnp.int32)])

    # Batched gather from factors-major tables -> (F, b_pad) directly, no .T.
    uf = jnp.take(user_factors_fm, user, axis=1)
    itf = jnp.take(item_factors_fm, item, axis=1)

    # --- explicit scoped-VMEM budget -----------------------------------------
    block_bytes = n_factors * tb * itemsize
    vmem_bytes = 2 * 2 * block_bytes + 2 * 2 * tb * 4 + (2 << 20)  # dbl-buf + headroom
    vmem_bytes = int(min(max(vmem_bytes, 8 << 20), 64 << 20))

    grid_spec = pltpu.PrefetchScalarGridSpec(
        num_scalar_prefetch=0,
        grid=(b_pad // tb,),
        in_specs=[
            pl.BlockSpec((n_factors, tb), lambda b: (0, b)),
            pl.BlockSpec((n_factors, tb), lambda b: (0, b)),
        ],
        out_specs=pl.BlockSpec((1, tb), lambda b: (0, b)),
    )

    out = pl.pallas_call(
        mf_kernel,
        grid_spec=grid_spec,
        out_shape=jax.ShapeDtypeStruct((1, b_pad), jnp.float32),
        compiler_params=pltpu.CompilerParams(
            dimension_semantics=("parallel",),   # independent batch tiles
            vmem_limit_bytes=vmem_bytes,
        ),
    )(uf, itf)

    return out[0, :B]


if __name__ == "__main__":
    n_users, n_items, n_factors = 10, 12, 32
    batch = 8

    key = jax.random.PRNGKey(0)
    k_u, k_i, k_uu, k_ii = jax.random.split(key, 4)

    # Factors-major parameters (== nn.Embedding.weight.T, standard-normal init).
    user_factors_fm = jax.random.normal(k_u, (n_factors, n_users), jnp.float32)
    item_factors_fm = jax.random.normal(k_i, (n_factors, n_items), jnp.float32)

    # Deterministic index batches (equivalent of LongTensor inputs).
    user = jax.random.randint(k_uu, (batch,), 0, n_users, dtype=jnp.int32)
    item = jax.random.randint(k_ii, (batch,), 0, n_items, dtype=jnp.int32)

    pred = mf_forward(user_factors_fm, item_factors_fm, user, item)
    pred = jax.block_until_ready(pred)

    # Pure-JAX reference of the PyTorch forward (row-major tables).
    uf_w = user_factors_fm.T    # (n_users, F), same as nn.Embedding.weight
    if_w = item_factors_fm.T
    ref = jnp.sum(uf_w[user] * if_w[item], axis=1)

    assert pred.shape == (batch,)
    assert jnp.allclose(pred, ref, atol=1e-5, rtol=1e-5), (pred, ref)
    print("KERNEL_OK")
</pallas_src>

<mosaic_0001>
module attributes {stable_mosaic.version = 11 : i64} {
  func.func @mf_kernel(%arg0: i32, %arg1: memref<32x128xf32, #tpu.memory_space<vmem>>, %arg2: memref<32x128xf32, #tpu.memory_space<vmem>>, %arg3: memref<1x128xf32, #tpu.memory_space<vmem>>) attributes {dimension_semantics = [#tpu.dimension_semantics<parallel>], iteration_bounds = array<i64: 1>, scalar_prefetch = 0 : i64, scratch_operands = 0 : i64, tpu.core_type = #tpu.core_type<tc>, window_params = [{transform_indices = @transform_0, window_bounds = array<i64: 32, 128>}, {transform_indices = @transform_1, window_bounds = array<i64: 32, 128>}, {transform_indices = @transform_2, window_bounds = array<i64: 1, 128>}]} {
    %c0 = arith.constant 0 : index
    %c0_0 = arith.constant 0 : index
    %0 = vector.load %arg1[%c0, %c0_0] : memref<32x128xf32, #tpu.memory_space<vmem>>, vector<32x128xf32>
    %c0_1 = arith.constant 0 : index
    %c0_2 = arith.constant 0 : index
    %1 = vector.load %arg2[%c0_1, %c0_2] : memref<32x128xf32, #tpu.memory_space<vmem>>, vector<32x128xf32>
    %2 = arith.mulf %0, %1 : vector<32x128xf32>
    %cst = arith.constant dense<0.000000e+00> : vector<128xf32>
    %3 = vector.multi_reduction <add>, %2, %cst [0] : vector<32x128xf32> to vector<128xf32>
    %4 = vector.shape_cast %3 : vector<128xf32> to vector<1x128xf32>
    %c0_3 = arith.constant 0 : index
    %c0_4 = arith.constant 0 : index
    %5 = vector.load %arg3[%c0_3, %c0_4] : memref<1x128xf32, #tpu.memory_space<vmem>>, vector<1x128xf32>
    tpu.vector_store %arg3[%c0_3, %c0_4], %4 {strides = array<i32>} : memref<1x128xf32, #tpu.memory_space<vmem>>, vector<1x128xf32>,
    return
  }
  func.func @transform_0(%arg0: i32) -> (i32, i32) {
    %c0_i32 = arith.constant 0 : i32
    %c0_i32_0 = arith.constant 0 : i32
    return %c0_i32, %arg0 : i32, i32
  }
  func.func @transform_1(%arg0: i32) -> (i32, i32) {
    %c0_i32 = arith.constant 0 : i32
    %c0_i32_0 = arith.constant 0 : i32
    return %c0_i32, %arg0 : i32, i32
  }
  func.func @transform_2(%arg0: i32) -> (i32, i32) {
    %c0_i32 = arith.constant 0 : i32
    %c0_i32_0 = arith.constant 0 : i32
    return %c0_i32, %arg0 : i32, i32
  }
}

</mosaic_0001>

<bundles_post_ra>
// kernel: tpu_custom_call.1
= control target key start
LH: loop header
LB: loop body
LE: loop exit
PB: predicated region body
PF: predicated region fallthrough
CT: control target
= control target key end

     0   :  { %7 = vsyncpa [#allocation3], 0  ;;  %s178_s0 = inlined_call_operand.hbm [shape: f32[32,128], index: 0, kind: input, shape index: {}]   ;;  %s179_s1 = inlined_call_operand.hbm [shape: f32[32,128], index: 1, kind: input, shape index: {}]   ;;  %s180_s2 = inlined_call_operand.hbm [shape: f32[1,128], index: 2, kind: output, shape index: {}]  }
   0x1   :  { %8 = vsyncpa [#allocation6], 0 }
   0x2   :  { %9 = vsyncpa [#allocation4], 0  ;;  %s149_s9 = smov [#allocation2]  }
   0x3   :  { %s15_s10 = sshll.u32 %s149_s9, 4  ;;  %s16_s10 = int_to_ptr.vmem [resolvable:$true] %s15_s10 }
   0x4   :  { %s91_s11 = scalar_lea.vmem %s16_s10, 512  ;;  %p96_p1 = scmp.lt.s32.totalorder %s16_s10, %s16_s10 }
   0x5   :  { %p92_p0 = scmp.ne.s32.totalorder %s16_s10, %s91_s11  ;;  %p97_p2 = scmp.lt.s32.totalorder %s91_s11, %s91_s11 }
   0x7   :  { %p98_p3 = por %p97_p2, %p96_p1 }
   0x9   :  { %p99_p4 = pnand %p98_p3, %p92_p0 }
   0xb   :  { %102 = shalt.err (!%p99_p4)
}
   0xc   :  { %s150_s12 = smov 128   ;;  %s151_s13 = smov 8  }
   0xd   :  { %21 = dma.hbm_to_vmem [thread:$0]  %s178_s0, 512, %s16_s10, [#allocation3], %s150_s12, %s150_s12, %s151_s13  }
   0xe   :  { %s152_s16 = smov [#allocation5]  }
   0xf   :  { %s27_s17 = sshll.u32 %s152_s16, 4  ;;  %s28_s17 = int_to_ptr.vmem [resolvable:$true] %s27_s17 }
  0x10   :  { %s111_s18 = scalar_lea.vmem %s28_s17, 512  ;;  %p116_p6 = scmp.lt.s32.totalorder %s28_s17, %s28_s17 }
  0x11   :  { %p112_p5 = scmp.ne.s32.totalorder %s28_s17, %s111_s18  ;;  %p117_p7 = scmp.lt.s32.totalorder %s111_s18, %s111_s18 }
  0x13   :  { %p118_p8 = por %p117_p7, %p116_p6 }
  0x15   :  { %p119_p9 = pnand %p118_p8, %p112_p5 }
  0x17   :  { %122 = shalt.err (!%p119_p9)
}
  0x18   :  { %33 = dma.hbm_to_vmem [thread:$0]  %s179_s1, 512, %s28_s17, [#allocation6], %s150_s12, %s150_s12, %s151_s13  }
  0x19   :  { %143 = dma.done.wait [#allocation3], 512  }
  0x1a   :  { %144 = vsyncadd [#allocation3], 4294966784 }
  0x1b   :  { %145 = dma.done.wait [#allocation6], 512  }
  0x1c   :  { %146 = vsyncadd [#allocation6], 4294966784  ;;  %v40_v0 = vld [vmem:[#allocation2] sm:$0xff]  ;;  %v41_v1 = vld [vmem:[#allocation2 + $0x8] sm:$0xff]  ;;  %s153_s0 = smov [#allocation7]  }
  0x1d   :  { %v42_v2 = vld [vmem:[#allocation2 + $0x10] sm:$0xff]  ;;  %v43_v3 = vld [vmem:[#allocation2 + $0x18] sm:$0xff]  ;;  %v44_v4 = vld [vmem:[#allocation5] sm:$0xff]  ;;  %s68_s1 = sshll.u32 %s153_s0, 4  ;;  %s69_s1 = int_to_ptr.vmem [resolvable:$true] %s68_s1 }
  0x1e   :  { %v45_v5 = vld [vmem:[#allocation5 + $0x8] sm:$0xff]  ;;  %v46_v6 = vld [vmem:[#allocation5 + $0x10] sm:$0xff]  ;;  %v47_v7 = vld [vmem:[#allocation5 + $0x18] sm:$0xff]  ;;  %v48_v8 = vmul.f32 %v44_v4, %v40_v0  ;;  %s123_s21 = scalar_lea.vmem %s69_s1, 16  ;;  %s127_s22 = scalar_lea.vmem %s69_s1, 32 }
  0x1f   :  { %v49_v9 = vmul.f32 %v45_v5, %v41_v1  ;;  %v50_v10 = vmul.f32 %v46_v6, %v42_v2  ;;  %v51_v11 = vmul.f32 %v47_v7, %v43_v3  ;;  %p124_p10 = scmp.ne.s32.totalorder %s69_s1, %s123_s21  ;;  %p128_p11 = scmp.lt.s32.totalorder %s69_s1, %s69_s1 }
  0x20   :  { %p129_p12 = scmp.lt.s32.totalorder %s127_s22, %s123_s21 }
  0x21   :  { %v52_v12 = vadd.f32 %v49_v9, %v48_v8 }
  0x22   :  { %p130_p13 = por %p129_p12, %p128_p11 }
  0x23   :  { %v53_v13 = vadd.f32 %v52_v12, %v50_v10 }
  0x24   :  { %p131_p0 = pnand %p130_p13, %p124_p10 }
  0x25   :  { %v54_v14 = vadd.f32 %v53_v13, %v51_v11 }
  0x27   :  { %v55_v15 = vrot.slane %v54_v14, 4 }
  0x29   :  { %v56_v16 = vadd.f32 %v55_v15, %v54_v14 }
  0x2b   :  { %v57_v17 = vrot.slane %v56_v16, 2 }
  0x2d   :  { %v58_v18 = vadd.f32 %v57_v17, %v56_v16 }
  0x2f   :  { %v59_v19 = vrot.slane %v58_v18, 1 }
  0x31   :  { %v60_v20 = vadd.f32 %v59_v19, %v58_v18 }
  0x33   :  { %61 = vst [vmem:[#allocation7] sm:$0x1] %v60_v20 }
  0x34   :  { %134 = shalt.err (!%p131_p0)
}
  0x35   :  { %71 = dma.vmem_to_hbm [thread:$0]  %s69_s1, 16, %s180_s2, [#allocation4]  }
  0x36   :  { %147 = dma.done.wait [#allocation4], 16  }
  0x37   :  { %148 = vsyncadd [#allocation4], 4294967280 }
  0x38   :  { %75 = vsyncpa [#allocation3], 1 }
  0x39   :  { %76 = vsyncpa [#allocation6], 1 }
  0x3a   :  { %77 = vsyncpa [#allocation4], 1 }

</bundles_post_ra>
